<compile_context>
chip_gen: v6e
topology: v6e:2x2x1
jax: 0.10.0
libtpu: 0.0.40
codegen_flags: <defaults>
</compile_context>

<pallas_src>
import functools

import jax
import jax.numpy as jnp
from jax.experimental import pallas as pl
from jax.experimental.pallas import tpu as pltpu


# ---------------------------------------------------------------------------
# Pallas kernel: fused  bf16 GEMM (f32 acc)  ->  + per-channel shift  ->  act
# ---------------------------------------------------------------------------
def _activate(y, act):
    if act == "leaky":
        return jnp.where(y > 0, y, 0.2 * y)
    if act == "relu":
        return jnp.maximum(y, 0.0)
    if act == "tanh":
        return jnp.tanh(y)
    return y


def _gemm_shift_act_kernel(p_ref, w_ref, b_ref, o_ref, *, act):
    acc = jnp.dot(p_ref[...], w_ref[...], preferred_element_type=jnp.float32)
    y = _activate(acc + b_ref[...], act)      # f32 affine + activation (v5e-safe)
    o_ref[...] = y.astype(o_ref.dtype)        # bf16, full-lane (128) store


_MIN_PALLAS_ROWS = 256        # below this a pallas_call launch costs more than the math
_VMEM_BUDGET = 20 * 1024 * 1024


def _pick_tm(mg, kg, ng):
    """Largest row tile that divides mg, fits the VMEM budget and (when possible)
    leaves >= 2 grid steps so megacore / multi-TC chips can shard the loop."""
    for t in (4096, 2048, 1024, 512, 256, 128):
        if mg % t:
            continue
        if t > 128 and mg // t < 2:
            continue
        vmem = (2 * t * kg * 2          # patches tile, double buffered, bf16
                + 2 * kg * ng * 2       # resident weight (2 pipeline bufs), bf16
                + 2 * t * ng * 2        # output tile, double buffered, bf16
                + 2 * ng * 4            # shift
                + 2 * t * ng * 4)       # f32 accumulator / epilogue temporaries
        if vmem <= _VMEM_BUDGET:
            return t
    return None


def fused_gemm(patches, wmat, shift, act):
    """act(patches @ wmat + shift): patches (M, K) bf16, wmat (K, N) bf16
    (BN scale pre-folded), shift (N,) f32.  Returns (M, N) bf16."""
    M, K = patches.shape
    N = wmat.shape[-1]
    shift = shift.astype(jnp.float32)

    # Row grouping: pack g = 128//N consecutive output rows into one 128-lane GEMM
    # row (block-diagonal weight) so stores are lane-dense and the MXU N is >= 128.
    g = 1
    if N < 128 and 128 % N == 0 and M % (128 // N) == 0:
        g = 128 // N
    mg, kg, ng = M // g, K * g, N * g

    tm = None
    if mg >= _MIN_PALLAS_ROWS and ng % 128 == 0:
        tm = _pick_tm(mg, kg, ng)
    if tm is None:             # tiny / pathological shapes (e.g. Cout=3): plain XLA dot
        y = jnp.dot(patches, wmat, preferred_element_type=jnp.float32)
        return _activate(y + shift[None, :], act).astype(jnp.bfloat16)

    if g > 1:
        patches = patches.reshape(mg, kg)                  # free row-major regroup
        eye = jnp.eye(g, dtype=wmat.dtype)
        wmat = (eye[:, None, :, None] * wmat[None, :, None, :]).reshape(kg, ng)
        shift = jnp.tile(shift, g)
    shift2 = shift.reshape(1, ng)

    cost = pl.CostEstimate(
        flops=2 * mg * kg * ng,
        transcendentals=(mg * ng) if act == "tanh" else 0,
        bytes_accessed=mg * kg * 2 + kg * ng * 2 + mg * ng * 2 + ng * 4,
    )
    vmem_need = (2 * tm * kg * 2 + 2 * kg * ng * 2 + 2 * tm * ng * 2
                 + 2 * ng * 4 + 2 * tm * ng * 4)
    out = pl.pallas_call(
        functools.partial(_gemm_shift_act_kernel, act=act),
        out_shape=jax.ShapeDtypeStruct((mg, ng), jnp.bfloat16),
        grid=(mg // tm,),
        in_specs=[
            pl.BlockSpec((tm, kg), lambda i: (i, 0)),       # patch row tile
            pl.BlockSpec((kg, ng), lambda i: (0, 0)),       # resident weight
            pl.BlockSpec((1, ng), lambda i: (0, 0)),        # per-channel shift
        ],
        out_specs=pl.BlockSpec((tm, ng), lambda i: (i, 0)),
        compiler_params=pltpu.CompilerParams(
            dimension_semantics=("parallel",),
            vmem_limit_bytes=int(min(max(2 * vmem_need, 32 << 20), 64 << 20)),
        ),
        cost_estimate=cost,
        # TODO(synk): allow_input_fusion on the patches operand (or in-kernel patch
        # construction) to avoid the im2col HBM round trip.
    )(patches, wmat, shift2)
    return out.reshape(M, N)            # same row-major bytes: free layout plumbing


# ---------------------------------------------------------------------------
# Conv layers (NHWC, bf16 activations)
# ---------------------------------------------------------------------------
def conv_down(x, w, scale, shift, act, pad_mode):
    """Conv2d(k=4, s=2, p=1) + folded-BN/bias shift + activation.
    x: (N, H, W, Cin) bf16;  w: (Cout, Cin, 4, 4) f32 (PyTorch layout)."""
    N, H, W_, C = x.shape
    Cout = w.shape[0]
    OH, OW = H // 2, W_ // 2
    xp = jnp.pad(x, ((0, 0), (1, 1), (1, 1), (0, 0)), mode=pad_mode)
    # NHWC im2col: 16 strided slabs concatenated on the channel axis (no transposes)
    slabs = [xp[:, kh::2, kw::2, :][:, :OH, :OW, :]
             for kh in range(4) for kw in range(4)]
    patches = jnp.concatenate(slabs, axis=-1).reshape(N * OH * OW, 16 * C)
    wmat = (w * scale[:, None, None, None]).transpose(2, 3, 1, 0).reshape(16 * C, Cout)
    y = fused_gemm(patches.astype(jnp.bfloat16), wmat.astype(jnp.bfloat16), shift, act)
    return y.reshape(N, OH, OW, Cout)


# kernel taps used by output phase p for window offsets a = 0, 1
_PHASE_TAPS = ((3, 1), (2, 0))


def conv_up(x, w, scale, shift, act):
    """ConvTranspose2d(k=4, s=2, p=1) + folded-BN shift + activation.
    Sub-pixel decomposition fused over the 4 output phases: one GEMM of a 9-slab
    (3x3 window) patch matrix (M, 9*Cin) against a (9*Cin, 4*Cout) weight in which
    each phase only reads its own 2x2 sub-window (zeros elsewhere).
    x: (N, H, W, Cin) bf16;  w: (Cin, Cout, 4, 4) f32 (PyTorch layout)."""
    N, H, W_, C = x.shape
    Cout = w.shape[1]
    xz = jnp.pad(x, ((0, 0), (1, 1), (1, 1), (0, 0)))          # zero pad by 1
    slabs = [xz[:, dy:dy + H, dx:dx + W_, :] for dy in range(3) for dx in range(3)]
    patches = jnp.concatenate(slabs, axis=-1).reshape(N * H * W_, 9 * C)
    wf = w * scale[None, :, None, None]
    blocks = []
    for dy in range(3):
        for dx in range(3):
            row = []
            for py in range(2):
                for px in range(2):
                    a, b = dy - py, dx - px
                    if 0 <= a <= 1 and 0 <= b <= 1:
                        row.append(wf[:, :, _PHASE_TAPS[py][a], _PHASE_TAPS[px][b]])
                    else:
                        row.append(jnp.zeros((C, Cout), wf.dtype))
            blocks.append(jnp.concatenate(row, axis=1))        # (C, 4*Cout)
    wfused = jnp.concatenate(blocks, axis=0)                   # (9C, 4*Cout)
    shift4 = jnp.tile(shift, 4)
    o = fused_gemm(patches.astype(jnp.bfloat16), wfused.astype(jnp.bfloat16),
                   shift4, act)                                # (M, 4*Cout)
    o = o.reshape(N, H, W_, 2, 2, Cout).transpose(0, 1, 3, 2, 4, 5)
    # TODO(synk): have the next layer consume the phase-separated layout directly
    # instead of this interleave transpose (an extra HBM round trip per up layer).
    return o.reshape(N, 2 * H, 2 * W_, Cout)


# ---------------------------------------------------------------------------
# lax.conv references for self-checking (pre-folded / bf16-rounded weights)
# ---------------------------------------------------------------------------
def _ref_conv_down(x, wq, shift, act, pad_mode):
    xp = jnp.pad(x, ((0, 0), (1, 1), (1, 1), (0, 0)), mode=pad_mode)
    y = jax.lax.conv_general_dilated(
        xp, jnp.transpose(wq, (2, 3, 1, 0)), window_strides=(2, 2), padding="VALID",
        dimension_numbers=("NHWC", "HWIO", "NHWC"),
        precision=jax.lax.Precision.HIGHEST)
    return _activate(y + shift, act)


def _ref_conv_up(x, wq, shift, act):
    # ConvTranspose2d(k=4, s=2, p=1) == lhs-dilated correlation with flipped kernel
    k = jnp.transpose(jnp.flip(wq, axis=(2, 3)), (2, 3, 0, 1))
    y = jax.lax.conv_general_dilated(
        x, k, window_strides=(1, 1), padding=((2, 2), (2, 2)), lhs_dilation=(2, 2),
        dimension_numbers=("NHWC", "HWIO", "NHWC"),
        precision=jax.lax.Precision.HIGHEST)
    return _activate(y + shift, act)


def _self_check(key):
    """Validate the Pallas conv paths against lax references.  The references use the
    same bf16-rounded folded weights / bf16 inputs, so only the bf16 output store and
    f32 summation order differ -> tight tolerance."""
    k1, k2, k3, k4 = jax.random.split(key, 4)

    # conv_down: M=1024, Cout=32 -> grouped to 256 lane-dense rows (Pallas path).
    x = jax.random.normal(k1, (1, 64, 64, 16), jnp.float32).astype(jnp.bfloat16)
    w = jax.random.normal(k2, (32, 16, 4, 4), jnp.float32) / 16.0
    scale = 1.0 + 0.25 * jnp.cos(jnp.arange(32, dtype=jnp.float32))
    shift = 0.1 * jnp.sin(jnp.arange(32, dtype=jnp.float32))
    got = conv_down(x, w, scale, shift, "leaky", "reflect").astype(jnp.float32)
    wq = (w * scale[:, None, None, None]).astype(jnp.bfloat16).astype(jnp.float32)
    ref = _ref_conv_down(x.astype(jnp.float32), wq, shift, "leaky", "reflect")
    err = float(jnp.max(jnp.abs(got - ref)))
    assert err < 0.03, f"conv_down mismatch: max abs err {err}"

    # conv_up: M=1024, Cout=16 -> fused N=64, grouped to 512 lane-dense rows (Pallas).
    x = jax.random.normal(k3, (1, 32, 32, 16), jnp.float32).astype(jnp.bfloat16)
    w = jax.random.normal(k4, (16, 16, 4, 4), jnp.float32) / 16.0
    scale = 1.0 + 0.25 * jnp.sin(jnp.arange(16, dtype=jnp.float32))
    shift = 0.1 * jnp.cos(jnp.arange(16, dtype=jnp.float32))
    got = conv_up(x, w, scale, shift, "relu").astype(jnp.float32)
    wq = (w * scale[None, :, None, None]).astype(jnp.bfloat16).astype(jnp.float32)
    ref = _ref_conv_up(x.astype(jnp.float32), wq, shift, "relu")
    err = float(jnp.max(jnp.abs(got - ref)))
    assert err < 0.03, f"conv_up mismatch: max abs err {err}"


# ---------------------------------------------------------------------------
# Deterministic parameter initialization (synthetic, no checkpoint)
# ---------------------------------------------------------------------------
def init_params(key, in_ch=3, f=8):
    keys = iter(jax.random.split(key, 64))
    BN_EPS = 1e-5

    def convw(cout, cin):
        std = 1.0 / float((cin * 16) ** 0.5)
        return jax.random.normal(next(keys), (cout, cin, 4, 4), jnp.float32) * std

    def convtw(cin, cout):
        std = 1.0 / float((cin * 16) ** 0.5)
        return jax.random.normal(next(keys), (cin, cout, 4, 4), jnp.float32) * std

    def bias(c):
        return 0.01 * jax.random.normal(next(keys), (c,), jnp.float32)

    def bn(c):
        k1, k2, k3, k4 = jax.random.split(next(keys), 4)
        gamma = 1.0 + 0.1 * jax.random.normal(k1, (c,), jnp.float32)
        beta = 0.1 * jax.random.normal(k2, (c,), jnp.float32)
        rmean = 0.1 * jax.random.normal(k3, (c,), jnp.float32)
        rvar = 1.0 + 0.1 * jax.random.uniform(k4, (c,), jnp.float32)
        scale = gamma / jnp.sqrt(rvar + BN_EPS)    # eval-mode BN folded into affine
        shift = beta - rmean * scale
        return scale, shift

    P = {}
    P["init"] = (convw(f, in_ch), jnp.ones((f,), jnp.float32), bias(f))   # bias, no BN
    down_io = [(f, 2 * f), (2 * f, 4 * f), (4 * f, 8 * f),
               (8 * f, 8 * f), (8 * f, 8 * f), (8 * f, 8 * f)]
    P["down"] = []
    for cin, cout in down_io:
        w = convw(cout, cin)            # bias=False in Block down conv
        s, sh = bn(cout)
        P["down"].append((w, s, sh))
    P["bottleneck"] = (convw(8 * f, 8 * f), jnp.ones((8 * f,), jnp.float32), bias(8 * f))
    up_io = [(8 * f, 8 * f), (16 * f, 8 * f), (16 * f, 8 * f), (16 * f, 8 * f),
             (16 * f, 4 * f), (8 * f, 2 * f), (4 * f, f)]
    P["up"] = []
    for cin, cout in up_io:
        w = convtw(cin, cout)           # bias=False in Block up conv
        s, sh = bn(cout)
        P["up"].append((w, s, sh))
    P["final"] = (convw(in_ch, 2 * f), jnp.ones((in_ch,), jnp.float32), bias(in_ch))
    return P


# ---------------------------------------------------------------------------
# Generator forward (U-Net with skip connections), eval-mode semantics
# ---------------------------------------------------------------------------
def generator_forward(x_nchw, P):
    x = jnp.transpose(x_nchw, (0, 2, 3, 1)).astype(jnp.bfloat16)   # NHWC, bf16
    w, s, b = P["init"]
    d1 = conv_down(x, w, s, b, act="leaky", pad_mode="reflect")
    ds = [d1]
    h = d1
    for (w, s, sh) in P["down"]:                      # down1 .. down6: BN + LeakyReLU
        h = conv_down(h, w, s, sh, act="leaky", pad_mode="reflect")
        ds.append(h)
    w, s, b = P["bottleneck"]
    bott = conv_down(ds[-1], w, s, b, act="relu", pad_mode="reflect")

    w, s, sh = P["up"][0]
    u = conv_up(bott, w, s, sh, act="relu")           # up1 (dropout = identity, eval)
    skips = [ds[6], ds[5], ds[4], ds[3], ds[2], ds[1]]  # d7, d6, d5, d4, d3, d2
    for idx in range(1, 7):                           # up2 .. up7
        w, s, sh = P["up"][idx]
        u = conv_up(jnp.concatenate([u, skips[idx - 1]], axis=-1), w, s, sh, act="relu")

    w, s, b = P["final"]                 # final_up: stride-2 Conv2d (zero pad) + Tanh
    y = conv_down(jnp.concatenate([u, ds[0]], axis=-1), w, s, b,
                  act="tanh", pad_mode="constant")
    return jnp.transpose(y, (0, 3, 1, 2)).astype(jnp.float32)      # back to NCHW f32


if __name__ == "__main__":
    key = jax.random.PRNGKey(0)
    kx, kp, kc = jax.random.split(key, 3)

    _self_check(kc)                      # validate Pallas conv paths vs lax.conv refs

    # Smallest spatial size the 8-stage down path admits is 256 (bottleneck reaches
    # 1x1); features reduced to 8 to keep the example small.
    x = jax.random.normal(kx, (1, 3, 256, 256), jnp.float32)
    params = init_params(kp, in_ch=3, f=8)

    fwd = jax.jit(generator_forward)
    y = jax.block_until_ready(fwd(x, params))

    assert y.shape == (1, 3, 64, 64), y.shape   # final_up is a stride-2 Conv2d per spec
    assert bool(jnp.all(jnp.isfinite(y)))
    assert bool(jnp.all(jnp.abs(y) <= 1.0))     # tanh output range
    print("KERNEL_OK")
</pallas_src>

<mosaic_0001>
module attributes {stable_mosaic.version = 11 : i64} {
  func.func @_gemm_shift_act_kernel(%arg0: i32, %arg1: memref<128x1024xbf16, #tpu.memory_space<vmem>>, %arg2: memref<1024x128xbf16, #tpu.memory_space<vmem>>, %arg3: memref<1x128xf32, #tpu.memory_space<vmem>>, %arg4: memref<128x128xbf16, #tpu.memory_space<vmem>>) attributes {dimension_semantics = [#tpu.dimension_semantics<parallel>], iteration_bounds = array<i64: 2>, scalar_prefetch = 0 : i64, scratch_operands = 0 : i64, tpu.core_type = #tpu.core_type<tc>, window_params = [{transform_indices = @transform_0, window_bounds = array<i64: 128, 1024>}, {pipeline_mode = #tpu.pipeline_mode<synchronous>, transform_indices = @transform_1, window_bounds = array<i64: 1024, 128>}, {pipeline_mode = #tpu.pipeline_mode<synchronous>, transform_indices = @transform_2, window_bounds = array<i64: 1, 128>}, {transform_indices = @transform_3, window_bounds = array<i64: 128, 128>}]} {
    %c0 = arith.constant 0 : index
    %c0_0 = arith.constant 0 : index
    %0 = vector.load %arg1[%c0, %c0_0] : memref<128x1024xbf16, #tpu.memory_space<vmem>>, vector<128x1024xbf16>
    %c0_1 = arith.constant 0 : index
    %c0_2 = arith.constant 0 : index
    %1 = vector.load %arg2[%c0_1, %c0_2] : memref<1024x128xbf16, #tpu.memory_space<vmem>>, vector<1024x128xbf16>
    %cst = arith.constant dense<0.000000e+00> : vector<128x128xf32>
    %2 = tpu.matmul %0, %1, %cst {dimension_numbers = #tpu.dot_dimension_numbers<[1], [0], [0], [1], [0, 0, 1, 1], [], []>} : vector<128x1024xbf16>, vector<1024x128xbf16>, vector<128x128xf32> -> vector<128x128xf32>
    %c0_3 = arith.constant 0 : index
    %c0_4 = arith.constant 0 : index
    %3 = vector.load %arg3[%c0_3, %c0_4] : memref<1x128xf32, #tpu.memory_space<vmem>>, vector<1x128xf32>
    %4 = vector.broadcast %3 : vector<1x128xf32> to vector<128x128xf32>
    %5 = arith.addf %2, %4 : vector<128x128xf32>
    %cst_5 = arith.constant 0.000000e+00 : f32
    %6 = vector.broadcast %cst_5 : f32 to vector<128x128xf32>
    %7 = arith.cmpf ogt, %5, %6 : vector<128x128xf32>
    %cst_6 = arith.constant 2.000000e-01 : f32
    %8 = vector.broadcast %cst_6 : f32 to vector<128x128xf32>
    %9 = arith.mulf %8, %5 : vector<128x128xf32>
    %10 = arith.select %7, %5, %9 : vector<128x128xi1>, vector<128x128xf32>
    %11 = arith.truncf %10 : vector<128x128xf32> to vector<128x128xbf16>
    %c0_7 = arith.constant 0 : index
    %c0_8 = arith.constant 0 : index
    %12 = vector.load %arg4[%c0_7, %c0_8] : memref<128x128xbf16, #tpu.memory_space<vmem>>, vector<128x128xbf16>
    tpu.vector_store %arg4[%c0_7, %c0_8], %11 {strides = array<i32>} : memref<128x128xbf16, #tpu.memory_space<vmem>>, vector<128x128xbf16>,
    return
  }
  func.func @transform_0(%arg0: i32) -> (i32, i32) {
    %c0_i32 = arith.constant 0 : i32
    %c0_i32_0 = arith.constant 0 : i32
    return %arg0, %c0_i32 : i32, i32
  }
  func.func @transform_1(%arg0: i32) -> (i32, i32) {
    %c0_i32 = arith.constant 0 : i32
    %c0_i32_0 = arith.constant 0 : i32
    %c0_i32_1 = arith.constant 0 : i32
    return %c0_i32, %c0_i32_0 : i32, i32
  }
  func.func @transform_2(%arg0: i32) -> (i32, i32) {
    %c0_i32 = arith.constant 0 : i32
    %c0_i32_0 = arith.constant 0 : i32
    %c0_i32_1 = arith.constant 0 : i32
    return %c0_i32, %c0_i32_0 : i32, i32
  }
  func.func @transform_3(%arg0: i32) -> (i32, i32) {
    %c0_i32 = arith.constant 0 : i32
    %c0_i32_0 = arith.constant 0 : i32
    return %arg0, %c0_i32 : i32, i32
  }
}

</mosaic_0001>

<bundles_post_ra>
// kernel: tpu_custom_call.1
= control target key start
LH: loop header
LB: loop body
LE: loop exit
PB: predicated region body
PF: predicated region fallthrough
CT: control target
= control target key end

     0   :  { %8 = vsyncpa [#allocation3], 0  ;;  %s2884_s0 = inlined_call_operand.hbm [shape: bf16[256,1024], index: 0, kind: input, shape index: {}]   ;;  %s2885_s1 = inlined_call_operand.hbm [shape: bf16[1024,128], index: 1, kind: input, shape index: {}]   ;;  %s2886_s2 = inlined_call_operand.vmem [shape: f32[1,128], index: 2, kind: input, shape index: {}]   ;;  %s2887_s3 = inlined_call_operand.hbm [shape: bf16[256,128], index: 3, kind: output, shape index: {}]  }
   0x1   :  { %10 = vsyncpa [#allocation3 + $0x1], 0 }
   0x2   :  { %11 = vsyncpa [#allocation6], 0 }
   0x3   :  { %12 = vsyncpa [#allocation4], 0 }
   0x4   :  { %14 = vsyncpa [#allocation4 + $0x1], 0  ;;  %s2488_s12 = smov 0   ;;  %s2490_s13 = smov 0  }
   0x5   :  { %s2492_s14 = smov 0   ;;  %s2494_s15 = smov 0  }
   0x6 LB: > { %s2509_s16 = sadd.s32 4294967295, %s2457_s15   ;;  %s1724_s17 = sadd.s32 4294967294, %s2457_s15   ;;  %s2457_s15 = sphi %s2494_s15, %s2909_s15   ;;  %s2453_s14 = sphi %s2492_s14, %s2908_s14   ;;  %s2449_s13 = sphi %s2490_s13, %s2907_s13   ;;  %s2445_s12 = sphi %s2488_s12, %s2906_s12  }
   0x7   : > { %p40_p0 = scmp.ne.s32.totalorder %s2449_s13, %s2445_s12  ;;  %p2888_p1 = scmp.eq.s32.totalorder %s2509_s16, 0 }
   0x8   : > { %p112_p3 = scmp.eq.s32.totalorder %s1724_s17, 1  ;;  %p1725_p5 = scmp.ge.s32.totalorder %s2457_s15, 1 }
   0x9   : > { %p2518_p4 = por %p2888_p1, %p40_p0  ;;  %p119_p7 = scmp.lt.s32.totalorder %s2457_s15, 3 }
   0xa   : > { %p2523_p6 = por %p112_p3, %p40_p0  ;;  %s2459_s21 = smov [#allocation5]  }
   0xb   : > { %s2892_s18 = scalar_select %p2518_p4, 1, 0 }
   0xc   : > { %s2893_s19 = scalar_select %p2523_p6, 1, 0 }
   0xd   : > { %p2528_p8 = pnand %p1725_p5, %p119_p7  ;;  %s131_s22 = sshll.u32 %s2459_s21, 4  ;;  %s132_s22 = int_to_ptr.vmem [resolvable:$true] %s131_s22 }
   0xe   : > { %s2542_s24 = sadd.s32 1, %s2457_s15   ;;  %s27_s25 = sadd.s32 1, %s2453_s14 }
   0xf   : > { %s2894_s20 = scalar_select %p2528_p8, 1, 0 }
  0x10   : > { %p2216_p9 = pneg %p2528_p8  ;;  %s24_s26 = ssub.s32 %s2457_s15, %s2542_s24 }
  0x11   : > { %s2346_s27 = scalar_lea.vmem %s132_s22, 8192  ;;  %p2354_p5 = scmp.lt.s32.totalorder %s132_s22, %s132_s22 }
  0x12   : > { %p2537_p11 = pnand %p2216_p9, %p2888_p1  ;;  %p2347_p13 = scmp.ne.s32.totalorder %s132_s22, %s2346_s27 }
  0x13   : > { %p2355_p7 = scmp.lt.s32.totalorder %s2346_s27, %s2346_s27 }
  0x14   : > { %p2337_p12 = pneg %p2537_p11 }
  0x15   : > { %p2356_p10 = por %p2355_p7, %p2354_p5 }
  0x16   : > { %p2349_p0 = pnand %p2347_p13, %p2337_p12 }
  0x18   : > { %p2350_p3 = pneg %p2349_p0 }
  0x1a   : > { %p2357_p2 = pnand %p2356_p10, %p2350_p3 }
  0x1c   : > { %2360 = shalt.err (!%p2357_p2)
}
  0x1d   : > { %s2460_s28 = smov 64   ;;  %s2461_s29 = smov 4  }
  0x1e   : > { %2219 = dma.hbm_to_vmem [thread:$0]  (!%p2537_p11), %s2885_s1, 8192, %s132_s22, [#allocation6], %s2460_s28, %s2460_s28, %s2461_s29  }
  0x1f   : > { %p25_p9 = scmp.eq.s32.totalorder %s24_s26, 0  ;;  %p34_p12 = scmp.ne.s32.totalorder %s2453_s14, %s2449_s13 }
  0x20   : > { %p35_p10 = scmp.eq.s32.totalorder %s2457_s15, 0  ;;  %p2229_p2 = scmp.lt.s32.totalorder %s2457_s15, 2 }
  0x21   : > { %s2559_s5 = scalar_select %p25_p9, %s2453_s14, %s27_s25  }
  0x22   : > { %p36_p13 = por %p35_p10, %p34_p12  ;;  %p2896_p0 = scmp.eq.s32.totalorder %s2509_s16, 1 }
  0x23   : > { %s148_s7 = sand.u32 1, %s2453_s14   ;;  %s1887_s8 = sshll.u32 %s2457_s15, 13 }
  0x24   : > { %p2563_p3 = por %p2896_p0, %p34_p12  ;;  %s1728_s9 = sshll.u32 %s148_s7, 9 }
  0x25   : > { %s2572_s17 = scalar_lea.hbm %s2884_s0, %s1887_s8  ;;  %s152_s21 = scalar_lea.vmem [#allocation2], %s1728_s9 }
  0x26   : > { %s2897_s6 = scalar_select %p2563_p3, 1, 0 }
  0x27   : > { %s160_s22 = sshll.u32 %s152_s21, 4  ;;  %p2574_p11 = pnand %p2229_p2, %p36_p13  ;;  %s2578_s22 = int_to_ptr.vmem [resolvable:$true] %s160_s22 }
  0x28   : > { %s2580_s25 = scalar_lea.sflag [#allocation3], %s148_s7  ;;  %s2361_s26 = scalar_lea.hbm %s2572_s17, 8192 }
  0x29   : > { %p2362_p5 = scmp.ne.s32.totalorder %s2572_s17, %s2361_s26  ;;  %p2363_p7 = pneg %p2574_p11 }
  0x2a   : > { %s2366_s29 = scalar_lea.hbm %s2884_s0, 16384  ;;  %p2367_p10 = scmp.lt.s32.totalorder %s2572_s17, %s2884_s0 }
  0x2b   : > { %p2364_p9 = pnand %p2363_p7, %p2362_p5  ;;  %p2368_p2 = scmp.lt.s32.totalorder %s2366_s29, %s2361_s26 }
  0x2d   : > { %p2365_p12 = pneg %p2364_p9  ;;  %p2369_p13 = por %p2368_p2, %p2367_p10 }
  0x2f   : > { %p2370_p0 = pnand %p2369_p13, %p2365_p12 }
  0x31   : > { %2373 = shalt.err (!%p2370_p0)
}
  0x32   : > { %s2374_s7 = scalar_lea.vmem %s2578_s22, 8192  ;;  %s2462_s8 = smov [#allocation2]  }
  0x33   : > { %p2375_p1 = scmp.ne.s32.totalorder %s2578_s22, %s2374_s7  ;;  %s2379_s9 = sshll.u32 %s2462_s8, 4  ;;  %s2380_s9 = int_to_ptr.vmem [resolvable:$false] %s2379_s9 }
  0x34   : > { %s2381_s10 = scalar_lea.vmem %s2380_s9, 16384  ;;  %p2382_p9 = scmp.lt.s32.totalorder %s2578_s22, %s2380_s9 }
  0x35   : > { %p2377_p6 = pnand %p2375_p1, %p2363_p7  ;;  %p2383_p3 = scmp.lt.s32.totalorder %s2381_s10, %s2374_s7 }
  0x37   : > { %p2378_p5 = pneg %p2377_p6  ;;  %p2384_p4 = por %p2383_p3, %p2382_p9 }
  0x39   : > { %p2385_p8 = pnand %p2384_p4, %p2378_p5 }
  0x3b   : > { %2388 = shalt.err (!%p2385_p8)
}
  0x3c   : > { %s2463_s11 = smov 512   ;;  %s2464_s21 = smov 32  }
  0x3d   : > { %2223 = dma.hbm_to_vmem [thread:$0]  (!%p2574_p11), %s2572_s17, 8192, %s2578_s22, %s2580_s25, %s2463_s11, %s2463_s11, %s2464_s21  }
  0x3e   : > { %p2899_p1 = scmp.ne.s32.totalorder %s2894_s20, 0 }
  0x3f   : > { %s2604_s26 = sand.u32 (!%p2899_p1), 1, %s2449_s13   ;;  %p2900_p4 = scmp.ne.s32.totalorder (!%p2899_p1), %s2892_s18, 0 }
  0x40   : > { %172 = sbr.rel (%p2899_p1) target bundleno = 451 (0x1c3), region = 32  ;;  %s1733_s27 = sshll.u32 (!%p2899_p1), %s2604_s26, 9 }
  0x41   : > { %s175_s28 = scalar_lea.sflag (!%p2899_p1), [#allocation3], %s2604_s26  ;;  %s2608_s29 = scalar_lea.vmem (!%p2899_p1), [#allocation2], %s1733_s27 }
  0x45   : > { %2432 = dma.done.wait (%p2900_p4), %s175_s28, 8192  }
  0x46   : > { %2434 = vsyncadd (%p2900_p4), %s175_s28, 4294959104  ;;  %p2901_p6 = scmp.eq.s32.totalorder %s2509_s16, 0 }
  0x48   : > { %2436 = dma.done.wait (%p2901_p6), [#allocation6], 8192   ;;  %p2902_p8 = pmov %p2901_p6 }
  0x49   : > { %v2271_v0 = vld [vmem:[#allocation5 + $0x78] sm:$0xff]   ;;  %v2275_v4 = vld [vmem:[#allocation5 + $0x70] sm:$0xff]   ;;  %v2279_v8 = vld [vmem:[#allocation5 + $0x68] sm:$0xff]   ;;  %s1735_s17 = sshll.u32 %s2604_s26, 6  ;;  %s1904_s23 = sshll.u32 %s2509_s16, 10 }
  0x4a   : > { %2438 = vsyncadd (%p2902_p8), [#allocation6], 4294959104  ;;  %v2272_v1 = vld [vmem:[#allocation5 + $0xf8] sm:$0xff]   ;;  %1952 = vmatprep.subr.bf16.mxu0 %v2271_v0  ;;  %v2276_v5 = vld [vmem:[#allocation5 + $0xf0] sm:$0xff]   ;;  %s2791_s22 = scalar_lea.vmem [#allocation7], %s1735_s17  ;;  %s2838_s7 = scalar_lea.hbm %s2887_s3, %s1904_s23 }
  0x4b   : > { %v2273_v2 = vld [vmem:[#allocation5 + $0x38] sm:$0xff]   ;;  %2016 = vmatprep.subr.bf16.mxu1 %v2272_v1  ;;  %v2277_v6 = vld [vmem:[#allocation5 + $0x30] sm:$0xff]   ;;  %v2280_v9 = vld [vmem:[#allocation5 + $0xe8] sm:$0xff]   ;;  %s1641_s25 = sshll.u32 %s2791_s22, 4  ;;  %s1628_s8 = scalar_lea.sflag [#allocation4], %s2604_s26  ;;  %s2840_s25 = int_to_ptr.vmem [resolvable:$true] %s1641_s25 }
  0x4c   : > { %v2274_v3 = vld [vmem:[#allocation5 + $0xb8] sm:$0xff]   ;;  %1953 = vmatpush3.bf16.msra.mxu0 %v2273_v2  ;;  %v2278_v7 = vld [vmem:[#allocation5 + $0xb0] sm:$0xff]   ;;  %v2281_v10 = vld [vmem:[#allocation5 + $0x28] sm:$0xff]   ;;  %s2389_s9 = scalar_lea.vmem %s2840_s25, 1024  ;;  %p2903_p11 = scmp.ne.s32.totalorder %s2897_s6, 0 }
  0x4d   : > { %2017 = vmatpush3.bf16.msra.mxu1 %v2274_v3  ;;  %1954 = vmatprep.subr.bf16.mxu0 %v2275_v4  ;;  %v2282_v11 = vld [vmem:[#allocation5 + $0xa8] sm:$0xff]   ;;  %v2283_v12 = vld [vmem:[#allocation5 + $0x60] sm:$0xff]   ;;  %v2287_v16 = vld [vmem:[#allocation5 + $0x58] sm:$0xff]   ;;  %p2390_p3 = scmp.ne.s32.totalorder %s2840_s25, %s2389_s9  ;;  %s2465_s16 = smov [#allocation7]  }
  0x4e   : > { %2018 = vmatprep.subr.bf16.mxu1 %v2276_v5  ;;  %v2284_v13 = vld [vmem:[#allocation5 + $0xe0] sm:$0xff]   ;;  %v2288_v17 = vld [vmem:[#allocation5 + $0xd8] sm:$0xff]   ;;  %v2291_v20 = vld [vmem:[#allocation5 + $0x50] sm:$0xff]   ;;  %s2393_s10 = sshll.u32 %s2465_s16, 4  ;;  %s2394_s10 = int_to_ptr.vmem [resolvable:$false] %s2393_s10 }
  0x4f   : > { %v2285_v14 = vld [vmem:[#allocation5 + $0x20] sm:$0xff]   ;;  %v2289_v18 = vld [vmem:[#allocation5 + $0x18] sm:$0xff]   ;;  %v2292_v21 = vld [vmem:[#allocation5 + $0xd0] sm:$0xff]   ;;  %p2391_p7 = pnand %p2390_p3, %p2903_p11  ;;  %s2395_s11 = scalar_lea.vmem %s2394_s10, 2048 }
  0x50   : > { %1955 = vmatpush3.bf16.msra.mxu0 %v2277_v6  ;;  %v2286_v15 = vld [vmem:[#allocation5 + $0xa0] sm:$0xff]   ;;  %v2290_v19 = vld [vmem:[#allocation5 + $0x98] sm:$0xff]   ;;  %v2293_v22 = vld [vmem:[#allocation5 + $0x10] sm:$0xff]   ;;  %p2396_p10 = scmp.lt.s32.totalorder %s2840_s25, %s2394_s10  ;;  %p2397_p2 = scmp.lt.s32.totalorder %s2395_s11, %s2389_s9 }
  0x51   : > { %2019 = vmatpush3.bf16.msra.mxu1 %v2278_v7  ;;  %1956 = vmatprep.subr.bf16.mxu0 %v2279_v8  ;;  %v2294_v23 = vld [vmem:[#allocation5 + $0x90] sm:$0xff]   ;;  %v2295_v24 = vld [vmem:[#allocation5 + $0x48] sm:$0xff]   ;;  %v2299_v28 = vld [vmem:[#allocation5 + $0x40] sm:$0xff]   ;;  %p2392_p12 = pneg %p2391_p7 }
  0x52   : > { %2020 = vmatprep.subr.bf16.mxu1 %v2280_v9  ;;  %v2296_v25 = vld [vmem:[#allocation5 + $0xc8] sm:$0xff]   ;;  %v2300_v29 = vld [vmem:[#allocation5 + $0xc0] sm:$0xff]   ;;  %v2303_v40 = vld [vmem:[#allocation5 + $0x178] sm:$0xff]   ;;  %p2398_p13 = por %p2397_p2, %p2396_p10 }
  0x53   : > { %v2297_v26 = vld [vmem:[#allocation5 + $0x8] sm:$0xff]   ;;  %v2301_v30 = vld [vmem:[#allocation5] sm:$0xff]   ;;  %v2304_v41 = vld [vmem:[#allocation5 + $0x138] sm:$0xff]  }
  0x54   : > { %1957 = vmatpush3.bf16.msra.mxu0 %v2281_v10  ;;  %v2298_v27 = vld [vmem:[#allocation5 + $0x88] sm:$0xff]   ;;  %v2302_v31 = vld [vmem:[#allocation5 + $0x80] sm:$0xff]   ;;  %v2305_v42 = vld [vmem:[#allocation5 + $0x1f8] sm:$0xff]   ;;  %p2399_p0 = pnand %p2398_p13, %p2392_p12 }
  0x55   : > { %2021 = vmatpush3.bf16.msra.mxu1 %v2282_v11  ;;  %1958 = vmatprep.subr.bf16.mxu0 %v2283_v12  ;;  %v208_v32 = vld [vmem:[%s2608_s29] sm:$0xff]  ;;  %v209_v34 = vld [vmem:[%s2608_s29 + $0x8] sm:$0xff]  ;;  %v2306_v43 = vld [vmem:[#allocation5 + $0x1b8] sm:$0xff]  }
  0x56   : > { %2022 = vmatprep.subr.bf16.mxu1 %v2284_v13  ;;  %v212_v33 = vld [vmem:[%s2608_s29 + $0x20] sm:$0xff]  ;;  %v213_v37 = vld [vmem:[%s2608_s29 + $0x28] sm:$0xff]  ;;  %v2307_v50 = vld [vmem:[#allocation5 + $0x170] sm:$0xff]  }
  0x57   : > { %v1737_v35 = vcombine.low %v208_v32, %v212_v33  ;;  %v1738_v36 = vcombine.high %v208_v32, %v212_v33  ;;  %v1739_v38 = vcombine.low %v209_v34, %v213_v37  ;;  %v1740_v39 = vcombine.high %v209_v34, %v213_v37  ;;  %v216_v44 = vld [vmem:[%s2608_s29 + $0x40] sm:$0xff]  ;;  %v217_v47 = vld [vmem:[%s2608_s29 + $0x48] sm:$0xff]  ;;  %v2308_v52 = vld [vmem:[#allocation5 + $0x130] sm:$0xff]  }
  0x58   : > { %1959 = vmatpush3.bf16.msra.mxu0 %v2285_v14  ;;  %v220_v45 = vld [vmem:[%s2608_s29 + $0x60] sm:$0xff]  ;;  %v221_v48 = vld [vmem:[%s2608_s29 + $0x68] sm:$0xff]  ;;  %v2309_v54 = vld [vmem:[#allocation5 + $0x1f0] sm:$0xff]  }
  0x59   : > { %2023 = vmatpush3.bf16.msra.mxu1 %v2286_v15  ;;  %1960 = vmatprep.subr.bf16.mxu0 %v2287_v16  ;;  %v1746_v46 = vcombine.high %v216_v44, %v220_v45  ;;  %v1748_v49 = vcombine.high %v217_v47, %v221_v48  ;;  %v1745_v51 = vcombine.low %v216_v44, %v220_v45  ;;  %v2310_v55 = vld [vmem:[#allocation5 + $0x1b0] sm:$0xff]   ;;  %v224_v56 = vld [vmem:[%s2608_s29 + $0x80] sm:$0xff]  ;;  %v225_v58 = vld [vmem:[%s2608_s29 + $0x88] sm:$0xff] }
  0x5a   : > { %2024 = vmatprep.subr.bf16.mxu1 %v2288_v17  ;;  %1143 = vmatprep.mubr.bf16.mxu0 %v1738_v36  ;;  %v1747_v53 = vcombine.low %v217_v47, %v221_v48  ;;  %v228_v57 = vld [vmem:[%s2608_s29 + $0xa0] sm:$0xff]  ;;  %v229_v59 = vld [vmem:[%s2608_s29 + $0xa8] sm:$0xff]  ;;  %v2325_v32 = vld [vmem:[#allocation5 + $0x1d0] sm:$0xff]  }
  0x5b   : > { %1240 = vmatprep.mubr.bf16.mxu1 %v1740_v39  ;;  %v1754_v60 = vcombine.high %v224_v56, %v228_v57  ;;  %v1756_v61 = vcombine.high %v225_v58, %v229_v59  ;;  %v2311_v62 = vld [vmem:[#allocation5 + $0x168] sm:$0xff]   ;;  %v1753_v2 = vcombine.low %v224_v56, %v228_v57  ;;  %v232_v3 = vld [vmem:[%s2608_s29 + $0xc0] sm:$0xff]  ;;  %v1755_v6 = vcombine.low %v225_v58, %v229_v59  ;;  %v2326_v33 = vld [vmem:[#allocation5 + $0x190] sm:$0xff]  }
  0x5c   : > { %1961 = vmatpush3.bf16.msra.mxu0 %v2289_v18  ;;  %v2312_v63 = vld [vmem:[#allocation5 + $0x128] sm:$0xff]   ;;  %v236_v4 = vld [vmem:[%s2608_s29 + $0xe0] sm:$0xff]  ;;  %v2319_v18 = vld [vmem:[#allocation5 + $0x158] sm:$0xff]  }
  0x5d   : > { %2025 = vmatpush3.bf16.msra.mxu1 %v2290_v19  ;;  %1962 = vmatprep.subr.bf16.mxu0 %v2291_v20  ;;  %v2313_v0 = vld [vmem:[#allocation5 + $0x1e8] sm:$0xff]   ;;  %v1762_v7 = vcombine.high %v232_v3, %v236_v4  ;;  %v2315_v10 = vld [vmem:[#allocation5 + $0x160] sm:$0xff]   ;;  %v1761_v19 = vcombine.low %v232_v3, %v236_v4  ;;  %v2320_v20 = vld [vmem:[#allocation5 + $0x118] sm:$0xff]  }
  0x5e   : > { %2026 = vmatprep.subr.bf16.mxu1 %v2292_v21  ;;  %v2314_v1 = vld [vmem:[#allocation5 + $0x1a8] sm:$0xff]   ;;  %v2316_v11 = vld [vmem:[#allocation5 + $0x120] sm:$0xff]  }
  0x5f   : > { %v233_v5 = vld [vmem:[%s2608_s29 + $0xc8] sm:$0xff]  ;;  %v2317_v12 = vld [vmem:[#allocation5 + $0x1e0] sm:$0xff]  }
  0x60   : > { %1963 = vmatpush3.bf16.msra.mxu0 %v2293_v22  ;;  %v237_v8 = vld [vmem:[%s2608_s29 + $0xe8] sm:$0xff]  ;;  %v2318_v13 = vld [vmem:[#allocation5 + $0x1a0] sm:$0xff]  }
  0x61   : > { %2027 = vmatpush3.bf16.msra.mxu1 %v2294_v23  ;;  %1964 = vmatprep.subr.bf16.mxu0 %v2295_v24  ;;  %v1764_v9 = vcombine.high %v233_v5, %v237_v8  ;;  %v240_v14 = vld [vmem:[%s2608_s29 + $0x100] sm:$0xff]  ;;  %v241_v16 = vld [vmem:[%s2608_s29 + $0x108] sm:$0xff]  ;;  %v1763_v21 = vcombine.low %v233_v5, %v237_v8  ;;  %v2321_v23 = vld [vmem:[#allocation5 + $0x1d8] sm:$0xff]  }
  0x62   : > { %2028 = vmatprep.subr.bf16.mxu1 %v2296_v25  ;;  %v244_v15 = vld [vmem:[%s2608_s29 + $0x120] sm:$0xff]  ;;  %v245_v17 = vld [vmem:[%s2608_s29 + $0x128] sm:$0xff]  ;;  %v2322_v25 = vld [vmem:[#allocation5 + $0x198] sm:$0xff]  }
  0x63   : > { %v1770_v22 = vcombine.high %v240_v14, %v244_v15  ;;  %v1772_v24 = vcombine.high %v241_v16, %v245_v17  ;;  %v1769_v34 = vcombine.low %v240_v14, %v244_v15  ;;  %v2328_v39 = vld [vmem:[#allocation5 + $0x108] sm:$0xff]   ;;  %v2332_v48 = vld [vmem:[#allocation5 + $0x100] sm:$0xff]   ;;  %v219_v8 = vld [vmem:[%s2608_s29 + $0x58] sm:$0xff] }
  0x64   : > { %1965 = vmatpush3.bf16.msra.mxu0 %v2297_v26  ;;  %v248_v26 = vld [vmem:[%s2608_s29 + $0x140] sm:$0xff]  ;;  %v257_v44 = vld [vmem:[%s2608_s29 + $0x188] sm:$0xff]  ;;  %v226_v14 = vld [vmem:[%s2608_s29 + $0x90] sm:$0xff] }
  0x65   : > { %2029 = vmatpush3.bf16.msra.mxu1 %v2298_v27  ;;  %1966 = vmatprep.subr.bf16.mxu0 %v2299_v28  ;;  %v252_v27 = vld [vmem:[%s2608_s29 + $0x160] sm:$0xff]  ;;  %v2323_v28 = vld [vmem:[#allocation5 + $0x150] sm:$0xff]   ;;  %v261_v45 = vld [vmem:[%s2608_s29 + $0x1a8] sm:$0xff] }
  0x66   : > { %2030 = vmatprep.subr.bf16.mxu1 %v2300_v29  ;;  %v249_v29 = vld [vmem:[%s2608_s29 + $0x148] sm:$0xff]  ;;  %v1778_v36 = vcombine.high %v248_v26, %v252_v27  ;;  %v1777_v47 = vcombine.low %v248_v26, %v252_v27  ;;  %v1787_v59 = vcombine.low %v257_v44, %v261_v45  ;;  %v230_v15 = vld [vmem:[%s2608_s29 + $0xb0] sm:$0xff] }
  0x67   : > { %v265_v56 = vld [vmem:[%s2608_s29 + $0x1c8] sm:$0xff]  ;;  %v1757_v26 = vcombine.low %v226_v14, %v230_v15 }
  0x68   : > { %1967 = vmatpush3.bf16.msra.mxu0 %v2301_v30  ;;  %v253_v30 = vld [vmem:[%s2608_s29 + $0x168] sm:$0xff] }
  0x69   : > { %2031 = vmatpush3.bf16.msra.mxu1 %v2302_v31  ;;  %2080 = vmatprep.subr.bf16.mxu0 %v2303_v40  ;;  %v2324_v31 = vld [vmem:[#allocation5 + $0x110] sm:$0xff]   ;;  %v1780_v37 = vcombine.high %v249_v29, %v253_v30  ;;  %v2329_v40 = vld [vmem:[#allocation5 + $0x1c8] sm:$0xff]  }
  0x6a   : > { %2144 = vmatprep.subr.bf16.mxu1 %v2305_v42  ;;  %v260_v42 = vld [vmem:[%s2608_s29 + $0x1a0] sm:$0xff]  ;;  %v269_v57 = vld [vmem:[%s2608_s29 + $0x1e8] sm:$0xff] }
  0x6b   : > { %1144 = vmatmul.mubr.bf16.vlgmr.msra.gmra.mxu0 %v1737_v35  ;;  %v1771_v35 = vcombine.low %v241_v16, %v245_v17  ;;  %v1795_v3 = vcombine.low %v265_v56, %v269_v57  ;;  %v227_v16 = vld [vmem:[%s2608_s29 + $0x98] sm:$0xff] }
  0x6c   : > { %1241 = vmatmul.mubr.bf16.vlgmr.msra.gmra.mxu1 %v1739_v38  ;;  %2081 = vmatpush3.bf16.msra.mxu0 %v2304_v41  ;;  %v2327_v38 = vld [vmem:[#allocation5 + $0x148] sm:$0xff]   ;;  %v256_v41 = vld [vmem:[%s2608_s29 + $0x180] sm:$0xff]  ;;  %v231_v17 = vld [vmem:[%s2608_s29 + $0xb8] sm:$0xff] }
  0x6d   : > { %2145 = vmatpush3.bf16.msra.mxu1 %v2306_v43  ;;  %1151 = vmatprep.mubr.bf16.mxu0 %v1746_v46  ;;  %v2330_v43 = vld [vmem:[#allocation5 + $0x188] sm:$0xff]   ;;  %v2331_v46 = vld [vmem:[#allocation5 + $0x140] sm:$0xff]   ;;  %v1785_v58 = vcombine.low %v256_v41, %v260_v42  ;;  %v1759_v27 = vcombine.low %v227_v16, %v231_v17 }
  0x6e   : > { %1248 = vmatprep.mubr.bf16.mxu1 %v1748_v49  ;;  %2082 = vmatprep.subr.bf16.mxu0 %v2307_v50  ;;  %v1779_v49 = vcombine.low %v249_v29, %v253_v30  ;;  %v1786_v50 = vcombine.high %v256_v41, %v260_v42  ;;  %v242_v30 = vld [vmem:[%s2608_s29 + $0x110] sm:$0xff]  ;;  %v255_v41 = vld [vmem:[%s2608_s29 + $0x178] sm:$0xff] }
  0x6f   : > { %2146 = vmatprep.subr.bf16.mxu1 %v2309_v54  ;;  %v264_v54 = vld [vmem:[%s2608_s29 + $0x1c0] sm:$0xff] }
  0x70   : > { %2083 = vmatpush3.bf16.msra.mxu0 %v2308_v52  ;;  %v1788_v52 = vcombine.high %v257_v44, %v261_v45 }
  0x71   : > { %2147 = vmatpush3.bf16.msra.mxu1 %v2310_v55  ;;  %2084 = vmatprep.subr.bf16.mxu0 %v2311_v62  ;;  %v268_v55 = vld [vmem:[%s2608_s29 + $0x1e0] sm:$0xff]  ;;  %v210_v62 = vld [vmem:[%s2608_s29 + $0x10] sm:$0xff] }
  0x72   : > { %2148 = vmatprep.subr.bf16.mxu1 %v2313_v0  ;;  %v211_v0 = vld [vmem:[%s2608_s29 + $0x18] sm:$0xff] }
  0x73   : > { %1152 = vmatmul.mubr.bf16.gmra.mxu0 %v1745_v51  ;;  %v2333_v51 = vld [vmem:[#allocation5 + $0x1c0] sm:$0xff]  }
  0x74   : > { %1249 = vmatmul.mubr.bf16.gmra.mxu1 %v1747_v53  ;;  %1159 = vmatprep.mubr.bf16.mxu0 %v1754_v60  ;;  %v2334_v53 = vld [vmem:[#allocation5 + $0x180] sm:$0xff]   ;;  %v1794_v60 = vcombine.high %v264_v54, %v268_v55 }
  0x75   : > { %1256 = vmatprep.mubr.bf16.mxu1 %v1756_v61  ;;  %2085 = vmatpush3.bf16.msra.mxu0 %v2312_v63  ;;  %v1796_v61 = vcombine.high %v265_v56, %v269_v57  ;;  %v214_v63 = vld [vmem:[%s2608_s29 + $0x30] sm:$0xff]  ;;  %v267_v56 = vld [vmem:[%s2608_s29 + $0x1d8] sm:$0xff] }
  0x76   : > { %2149 = vmatpush3.bf16.msra.mxu1 %v2314_v1  ;;  %2086 = vmatprep.subr.bf16.mxu0 %v2315_v10  ;;  %v215_v1 = vld [vmem:[%s2608_s29 + $0x38] sm:$0xff]  ;;  %v1742_v4 = vcombine.high %v210_v62, %v214_v63  ;;  %v1741_v10 = vcombine.low %v210_v62, %v214_v63 }
  0x77   : > { %2150 = vmatprep.subr.bf16.mxu1 %v2317_v12  ;;  %v1744_v5 = vcombine.high %v211_v0, %v215_v1  ;;  %v271_v57 = vld [vmem:[%s2608_s29 + $0x1f8] sm:$0xff] }
  0x78   : > { %v1799_v63 = vcombine.low %v267_v56, %v271_v57 }
  0x79   : > { %2087 = vmatpush3.bf16.msra.mxu0 %v2316_v11  ;;  %v1743_v11 = vcombine.low %v211_v0, %v215_v1 }
  0x7a   : > { %2151 = vmatpush3.bf16.msra.mxu1 %v2318_v13  ;;  %2088 = vmatprep.subr.bf16.mxu0 %v2319_v18 }
  0x7b   : > { %1160 = vmatmul.mubr.bf16.gmra.mxu0 %v1753_v2  ;;  %2152 = vmatprep.subr.bf16.mxu1 %v2321_v23  ;;  %v1793_v2 = vcombine.low %v264_v54, %v268_v55  ;;  %v238_v23 = vld [vmem:[%s2608_s29 + $0xf0] sm:$0xff] }
  0x7c   : > { %1257 = vmatmul.mubr.bf16.gmra.mxu1 %v1755_v6  ;;  %1167 = vmatprep.mubr.bf16.mxu0 %v1762_v7  ;;  %v218_v6 = vld [vmem:[%s2608_s29 + $0x50] sm:$0xff] }
  0x7d   : > { %1264 = vmatprep.mubr.bf16.mxu1 %v1764_v9  ;;  %2089 = vmatpush3.bf16.msra.mxu0 %v2320_v20  ;;  %v222_v7 = vld [vmem:[%s2608_s29 + $0x70] sm:$0xff]  ;;  %v223_v9 = vld [vmem:[%s2608_s29 + $0x78] sm:$0xff]  ;;  %v1758_v20 = vcombine.high %v226_v14, %v230_v15 }
  0x7e   : > { %2153 = vmatpush3.bf16.msra.mxu1 %v2322_v25  ;;  %2090 = vmatprep.subr.bf16.mxu0 %v2323_v28  ;;  %v1750_v12 = vcombine.high %v218_v6, %v222_v7  ;;  %v1752_v13 = vcombine.high %v219_v8, %v223_v9  ;;  %v1749_v18 = vcombine.low %v218_v6, %v222_v7  ;;  %v239_v25 = vld [vmem:[%s2608_s29 + $0xf8] sm:$0xff]  ;;  %v266_v54 = vld [vmem:[%s2608_s29 + $0x1d0] sm:$0xff] }
  0x7f   : > { %2154 = vmatprep.subr.bf16.mxu1 %v2325_v32  ;;  %v243_v32 = vld [vmem:[%s2608_s29 + $0x118] sm:$0xff]  ;;  %v270_v55 = vld [vmem:[%s2608_s29 + $0x1f0] sm:$0xff] }
  0x80   : > { %v1797_v62 = vcombine.low %v266_v54, %v270_v55 }
  0x81   : > { %2091 = vmatpush3.bf16.msra.mxu0 %v2324_v31  ;;  %v246_v31 = vld [vmem:[%s2608_s29 + $0x130] sm:$0xff] }
  0x82   : > { %2155 = vmatpush3.bf16.msra.mxu1 %v2326_v33  ;;  %2092 = vmatprep.subr.bf16.mxu0 %v2327_v38  ;;  %v247_v33 = vld [vmem:[%s2608_s29 + $0x138] sm:$0xff]  ;;  %v250_v38 = vld [vmem:[%s2608_s29 + $0x150] sm:$0xff]  ;;  %v1773_v42 = vcombine.low %v242_v30, %v246_v31 }
  0x83   : > { %1168 = vmatmul.mubr.bf16.gmra.mxu0 %v1761_v19  ;;  %2156 = vmatprep.subr.bf16.mxu1 %v2329_v40  ;;  %v1751_v19 = vcombine.low %v219_v8, %v223_v9  ;;  %v251_v40 = vld [vmem:[%s2608_s29 + $0x158] sm:$0xff] }
  0x84   : > { %1265 = vmatmul.mubr.bf16.gmra.mxu1 %v1763_v21  ;;  %1175 = vmatprep.mubr.bf16.mxu0 %v1770_v22  ;;  %v1760_v21 = vcombine.high %v227_v16, %v231_v17  ;;  %v234_v22 = vld [vmem:[%s2608_s29 + $0xd0] sm:$0xff]  ;;  %v1784_v45 = vcombine.high %v251_v40, %v255_v41 }
  0x85   : > { %1272 = vmatprep.mubr.bf16.mxu1 %v1772_v24  ;;  %2093 = vmatpush3.bf16.msra.mxu0 %v2328_v39  ;;  %v235_v24 = vld [vmem:[%s2608_s29 + $0xd8] sm:$0xff]  ;;  %v1766_v28 = vcombine.high %v234_v22, %v238_v23  ;;  %v254_v39 = vld [vmem:[%s2608_s29 + $0x170] sm:$0xff] }
  0x86   : > { %2157 = vmatpush3.bf16.msra.mxu1 %v2330_v43  ;;  %2094 = vmatprep.subr.bf16.mxu0 %v2331_v46  ;;  %v1768_v29 = vcombine.high %v235_v24, %v239_v25  ;;  %v1775_v43 = vcombine.low %v243_v32, %v247_v33  ;;  %v1782_v44 = vcombine.high %v250_v38, %v254_v39  ;;  %v258_v46 = vld [vmem:[%s2608_s29 + $0x190] sm:$0xff] }
  0x87   : > { %2158 = vmatprep.subr.bf16.mxu1 %v2333_v51  ;;  %v1783_v51 = vcombine.low %v251_v40, %v255_v41 }
  0x89   : > { %2095 = vmatpush3.bf16.msra.mxu0 %v2332_v48  ;;  %v259_v48 = vld [vmem:[%s2608_s29 + $0x198] sm:$0xff] }
  0x8a   : > { %2159 = vmatpush3.bf16.msra.mxu1 %v2334_v53 }
  0x8b   : > { %1176 = vmatmul.mubr.bf16.gmra.mxu0 %v1769_v34  ;;  %v1765_v34 = vcombine.low %v234_v22, %v238_v23 }
  0x8c   : > { %1273 = vmatmul.mubr.bf16.gmra.mxu1 %v1771_v35  ;;  %1183 = vmatprep.mubr.bf16.mxu0 %v1778_v36  ;;  %v1767_v35 = vcombine.low %v235_v24, %v239_v25  ;;  %v1774_v36 = vcombine.high %v242_v30, %v246_v31 }
  0x8d   : > { %1280 = vmatprep.mubr.bf16.mxu1 %v1780_v37  ;;  %v1776_v37 = vcombine.high %v243_v32, %v247_v33 }
  0x93   : > { %1184 = vmatmul.mubr.bf16.gmra.mxu0 %v1777_v47  ;;  %v262_v47 = vld [vmem:[%s2608_s29 + $0x1b0] sm:$0xff] }
  0x94   : > { %1281 = vmatmul.mubr.bf16.gmra.mxu1 %v1779_v49  ;;  %1191 = vmatprep.mubr.bf16.mxu0 %v1786_v50  ;;  %v263_v49 = vld [vmem:[%s2608_s29 + $0x1b8] sm:$0xff]  ;;  %v1781_v50 = vcombine.low %v250_v38, %v254_v39 }
  0x95   : > { %1288 = vmatprep.mubr.bf16.mxu1 %v1788_v52  ;;  %v1790_v52 = vcombine.high %v258_v46, %v262_v47  ;;  %v1792_v53 = vcombine.high %v259_v48, %v263_v49 }
  0x9b   : > { %1192 = vmatmul.mubr.bf16.gmra.mxu0 %v1785_v58  ;;  %v1789_v58 = vcombine.low %v258_v46, %v262_v47 }
  0x9c   : > { %1289 = vmatmul.mubr.bf16.gmra.mxu1 %v1787_v59  ;;  %1199 = vmatprep.mubr.bf16.mxu0 %v1794_v60  ;;  %v1791_v59 = vcombine.low %v259_v48, %v263_v49  ;;  %v1798_v60 = vcombine.high %v266_v54, %v270_v55 }
  0x9d   : > { %1296 = vmatprep.mubr.bf16.mxu1 %v1796_v61  ;;  %v1800_v61 = vcombine.high %v267_v56, %v271_v57 }
  0xa3   : > { %1200 = vmatmul.mubr.bf16.gmra.mxu0 %v1793_v2  ;;  %v2685_v2 = vld [vmem:[%s2886_s2] ss:$0 sm:$0xff] }
  0xa4   : > { %1297 = vmatmul.mubr.bf16.gmra.mxu1 %v1795_v3  ;;  %1337 = vmatprep.mubr.bf16.mxu0 %v1742_v4 }
  0xa5   : > { %1434 = vmatprep.mubr.bf16.mxu1 %v1744_v5 }
  0xab   : > { %1338 = vmatmul.mubr.bf16.vlgmr.msra.gmra.mxu0 %v1741_v10 }
  0xac   : > { %1435 = vmatmul.mubr.bf16.vlgmr.msra.gmra.mxu1 %v1743_v11  ;;  %1345 = vmatprep.mubr.bf16.mxu0 %v1750_v12 }
  0xad   : > { %1442 = vmatprep.mubr.bf16.mxu1 %v1752_v13 }
  0xb3   : > { %1346 = vmatmul.mubr.bf16.gmra.mxu0 %v1749_v18 }
  0xb4   : > { %1443 = vmatmul.mubr.bf16.gmra.mxu1 %v1751_v19  ;;  %1353 = vmatprep.mubr.bf16.mxu0 %v1758_v20 }
  0xb5   : > { %1450 = vmatprep.mubr.bf16.mxu1 %v1760_v21 }
  0xbb   : > { %1354 = vmatmul.mubr.bf16.gmra.mxu0 %v1757_v26 }
  0xbc   : > { %1451 = vmatmul.mubr.bf16.gmra.mxu1 %v1759_v27  ;;  %1361 = vmatprep.mubr.bf16.mxu0 %v1766_v28 }
  0xbd   : > { %1458 = vmatprep.mubr.bf16.mxu1 %v1768_v29 }
  0xc3   : > { %1362 = vmatmul.mubr.bf16.gmra.mxu0 %v1765_v34 }
  0xc4   : > { %1459 = vmatmul.mubr.bf16.gmra.mxu1 %v1767_v35  ;;  %1369 = vmatprep.mubr.bf16.mxu0 %v1774_v36 }
  0xc5   : > { %1466 = vmatprep.mubr.bf16.mxu1 %v1776_v37 }
  0xcb   : > { %1370 = vmatmul.mubr.bf16.gmra.mxu0 %v1773_v42 }
  0xcc   : > { %1467 = vmatmul.mubr.bf16.gmra.mxu1 %v1775_v43  ;;  %1377 = vmatprep.mubr.bf16.mxu0 %v1782_v44 }
  0xcd   : > { %1474 = vmatprep.mubr.bf16.mxu1 %v1784_v45 }
  0xd3   : > { %1378 = vmatmul.mubr.bf16.gmra.mxu0 %v1781_v50 }
  0xd4   : > { %1475 = vmatmul.mubr.bf16.gmra.mxu1 %v1783_v51  ;;  %1385 = vmatprep.mubr.bf16.mxu0 %v1790_v52 }
  0xd5   : > { %1482 = vmatprep.mubr.bf16.mxu1 %v1792_v53 }
  0xdb   : > { %1386 = vmatmul.mubr.bf16.gmra.mxu0 %v1789_v58 }
  0xdc   : > { %1483 = vmatmul.mubr.bf16.gmra.mxu1 %v1791_v59  ;;  %1393 = vmatprep.mubr.bf16.mxu0 %v1798_v60 }
  0xdd   : > { %1490 = vmatprep.mubr.bf16.mxu1 %v1800_v61 }
  0xe3   : > { %1394 = vmatmul.mubr.bf16.gmra.mxu0 %v1797_v62 }
  0xe4   : > { %1491 = vmatmul.mubr.bf16.gmra.mxu1 %v1799_v63 }
 0x12b   : > { %v1968_v0 = vpop.f32.mrf.mxu0 }
 0x12c   : > { %v2032_v1 = vpop.f32.mrf.mxu1 }
 0x12d   : > { %v1969_v3 = vpop.f32.mrf.mxu0 }
 0x12e   : > { %v1970_v4 = vadd.f32 %v1969_v3, %v1968_v0  ;;  %v2033_v5 = vpop.f32.mrf.mxu1 }
 0x12f   : > { %v2034_v6 = vadd.f32 %v2033_v5, %v2032_v1  ;;  %v2687_v7 = vpop.f32.mrf.mxu0 }
 0x130   : > { %v1146_v8 = vadd.f32 %v1970_v4, %v2685_v2  ;;  %v2690_v9 = vpop.f32.mrf.mxu1 }
 0x131   : > { %v2692_v10 = vpop.f32.mrf.mxu0 }
 0x132   : > { %v2694_v11 = vadd.f32 %v2034_v6, %v1146_v8  ;;  %v2696_v12 = vpop.f32.mrf.mxu1 }
 0x133   : > { %v1974_v13 = vpop.f32.mrf.mxu0 }
 0x134   : > { %v2038_v14 = vpop.f32.mrf.mxu1 }
 0x135   : > { %v1975_v15 = vpop.f32.mrf.mxu0 }
 0x136   : > { %v1976_v16 = vadd.f32 %v1975_v15, %v1974_v13  ;;  %v2039_v17 = vpop.f32.mrf.mxu1 }
 0x137   : > { %v2040_v18 = vadd.f32 %v2039_v17, %v2038_v14  ;;  %v2698_v19 = vpop.f32.mrf.mxu0 }
 0x138   : > { %v1154_v20 = vadd.f32 %v1976_v16, %v2685_v2  ;;  %v2701_v21 = vpop.f32.mrf.mxu1 }
 0x139   : > { %v2703_v22 = vpop.f32.mrf.mxu0 }
 0x13a   : > { %v2705_v23 = vadd.f32 %v2040_v18, %v1154_v20  ;;  %v2707_v24 = vpop.f32.mrf.mxu1 }
 0x13b   : > { %v1980_v25 = vpop.f32.mrf.mxu0 }
 0x13c   : > { %v2044_v26 = vpop.f32.mrf.mxu1 }
 0x13d   : > { %v1981_v27 = vpop.f32.mrf.mxu0 }
 0x13e   : > { %v1982_v28 = vadd.f32 %v1981_v27, %v1980_v25  ;;  %v2045_v29 = vpop.f32.mrf.mxu1 }
 0x13f   : > { %v2046_v30 = vadd.f32 %v2045_v29, %v2044_v26  ;;  %v2709_v31 = vpop.f32.mrf.mxu0 }
 0x140   : > { %v1162_v32 = vadd.f32 %v1982_v28, %v2685_v2  ;;  %v2712_v33 = vpop.f32.mrf.mxu1 }
 0x141   : > { %v2714_v34 = vpop.f32.mrf.mxu0 }
 0x142   : > { %v2716_v35 = vadd.f32 %v2046_v30, %v1162_v32  ;;  %v2718_v36 = vpop.f32.mrf.mxu1 }
 0x143   : > { %v1986_v37 = vpop.f32.mrf.mxu0 }
 0x144   : > { %v2050_v38 = vpop.f32.mrf.mxu1 }
 0x145   : > { %v1987_v39 = vpop.f32.mrf.mxu0 }
 0x146   : > { %v1988_v40 = vadd.f32 %v1987_v39, %v1986_v37  ;;  %v2051_v41 = vpop.f32.mrf.mxu1 }
 0x147   : > { %v2052_v42 = vadd.f32 %v2051_v41, %v2050_v38  ;;  %v2720_v43 = vpop.f32.mrf.mxu0 }
 0x148   : > { %v1170_v44 = vadd.f32 %v1988_v40, %v2685_v2  ;;  %v2723_v45 = vpop.f32.mrf.mxu1 }
 0x149   : > { %v2725_v46 = vpop.f32.mrf.mxu0 }
 0x14a   : > { %v2727_v47 = vadd.f32 %v2052_v42, %v1170_v44  ;;  %v2729_v48 = vpop.f32.mrf.mxu1 }
 0x14b   : > { %v1992_v49 = vpop.f32.mrf.mxu0 }
 0x14c   : > { %v2056_v50 = vpop.f32.mrf.mxu1 }
 0x14d   : > { %v1993_v51 = vpop.f32.mrf.mxu0 }
 0x14e   : > { %v1994_v52 = vadd.f32 %v1993_v51, %v1992_v49  ;;  %v2057_v53 = vpop.f32.mrf.mxu1 }
 0x14f   : > { %v2058_v54 = vadd.f32 %v2057_v53, %v2056_v50  ;;  %v2731_v55 = vpop.f32.mrf.mxu0 }
 0x150   : > { %v1178_v56 = vadd.f32 %v1994_v52, %v2685_v2  ;;  %v2734_v57 = vpop.f32.mrf.mxu1  ;;  %v1973_v52 = vadd.f32 %v2692_v10, %v2687_v7  ;;  %v1979_v7 = vadd.f32 %v2703_v22, %v2698_v19  ;;  %v2043_v19 = vadd.f32 %v2707_v24, %v2701_v21 }
 0x151   : > { %v2736_v58 = vpop.f32.mrf.mxu0 }
 0x152   : > { %v2738_v59 = vadd.f32 %v2058_v54, %v1178_v56  ;;  %v2740_v60 = vpop.f32.mrf.mxu1 }
 0x153   : > { %v1998_v61 = vpop.f32.mrf.mxu0 }
 0x154   : > { %v2062_v62 = vpop.f32.mrf.mxu1 }
 0x155   : > { %v1999_v63 = vpop.f32.mrf.mxu0 }
 0x156   : > { %v2000_v0 = vadd.f32 %v1999_v63, %v1998_v61  ;;  %v2063_v1 = vpop.f32.mrf.mxu1  ;;  %v1149_v63 = vadd.f32 %v1973_v52, %v2685_v2 }
 0x157   : > { %v2064_v3 = vadd.f32 %v2063_v1, %v2062_v62  ;;  %v2742_v4 = vpop.f32.mrf.mxu0 }
 0x158   : > { %v1186_v5 = vadd.f32 %v2000_v0, %v2685_v2  ;;  %v2745_v6 = vpop.f32.mrf.mxu1 }
 0x159   : > { %v2747_v8 = vpop.f32.mrf.mxu0 }
 0x15a   : > { %v2749_v13 = vadd.f32 %v2064_v3, %v1186_v5  ;;  %v2751_v14 = vpop.f32.mrf.mxu1  ;;  %v2037_v5 = vadd.f32 %v2696_v12, %v2690_v9 }
 0x15b   : > { %v2004_v15 = vpop.f32.mrf.mxu0 }
 0x15c   : > { %v2068_v16 = vpop.f32.mrf.mxu1 }
 0x15d   : > { %v2005_v17 = vpop.f32.mrf.mxu0 }
 0x15e   : > { %v2006_v18 = vadd.f32 %v2005_v17, %v2004_v15  ;;  %v2069_v20 = vpop.f32.mrf.mxu1 }
 0x15f   : > { %v2070_v25 = vadd.f32 %v2069_v20, %v2068_v16  ;;  %v2753_v26 = vpop.f32.mrf.mxu0 }
 0x160   : > { %v1194_v27 = vadd.f32 %v2006_v18, %v2685_v2  ;;  %v2756_v28 = vpop.f32.mrf.mxu1  ;;  %v1246_v18 = vadd.f32 %v2037_v5, %v1149_v63 }
 0x161   : > { %v2758_v29 = vpop.f32.mrf.mxu0 }
 0x162   : > { %v2760_v30 = vadd.f32 %v2070_v25, %v1194_v27  ;;  %v2762_v32 = vpop.f32.mrf.mxu1 }
 0x163   : > { %v2010_v37 = vpop.f32.mrf.mxu0 }
 0x164   : > { %v2074_v38 = vpop.f32.mrf.mxu1 }
 0x165   : > { %v2011_v39 = vpop.f32.mrf.mxu0 }
 0x166   : > { %v2012_v40 = vadd.f32 %v2011_v39, %v2010_v37  ;;  %v2075_v41 = vpop.f32.mrf.mxu1 }
 0x167   : > { %v2076_v42 = vadd.f32 %v2075_v41, %v2074_v38  ;;  %v2764_v44 = vpop.f32.mrf.mxu0  ;;  %v1157_v41 = vadd.f32 %v1979_v7, %v2685_v2 }
 0x168   : > { %v1202_v49 = vadd.f32 %v2012_v40, %v2685_v2  ;;  %v2767_v50 = vpop.f32.mrf.mxu1 }
 0x169   : > { %v2769_v51 = vpop.f32.mrf.mxu0  ;;  %v1254_v63 = vadd.f32 %v2043_v19, %v1157_v41 }
 0x16a   : > { %v2773_v53 = vadd.f32 %v2076_v42, %v1202_v49  ;;  %v2775_v54 = vpop.f32.mrf.mxu1 }
 0x16b   : > { %v2096_v56 = vpop.f32.mrf.mxu0 }
 0x16c   : > { %v2160_v61 = vpop.f32.mrf.mxu1 }
 0x16d   : > { %v2097_v62 = vpop.f32.mrf.mxu0 }
 0x16e   : > { %v2098_v0 = vadd.f32 %v2097_v62, %v2096_v56  ;;  %v2161_v1 = vpop.f32.mrf.mxu1 }
 0x16f   : > { %v2099_v3 = vpop.f32.mrf.mxu0  ;;  %v2162_v16 = vadd.f32 %v2161_v1, %v2160_v61 }
 0x170   : > { %v1340_v15 = vadd.f32 %v2098_v0, %v2694_v11  ;;  %v2163_v17 = vpop.f32.mrf.mxu1  ;;  %v1985_v0 = vadd.f32 %v2714_v34, %v2709_v31 }
 0x171   : > { %v2100_v10 = vpop.f32.mrf.mxu0 }
 0x172   : > { %v1437_v20 = vadd.f32 %v2162_v16, %v1340_v15  ;;  %v2101_v25 = vadd.f32 %v2100_v10, %v2099_v3  ;;  %v2164_v27 = vpop.f32.mrf.mxu1 }
 0x173   : > { %v2102_v37 = vpop.f32.mrf.mxu0  ;;  %v2165_v39 = vadd.f32 %v2164_v27, %v2163_v17 }
 0x174   : > { %v1343_v38 = vadd.f32 %v2101_v25, %v1246_v18  ;;  %v2166_v40 = vpop.f32.mrf.mxu1  ;;  %v1515_v12 = vmul.f32 0.2, %v1437_v20  ;;  %vm1499_vm0 = vcmp.gt.f32.partialorder %v1437_v20, 0.0  ;;  %v1165_v25 = vadd.f32 %v1985_v0, %v2685_v2 }
 0x175   : > { %v2103_v9 = vpop.f32.mrf.mxu0 }
 0x176   : > { %v1440_v11 = vadd.f32 %v2165_v39, %v1343_v38  ;;  %v2104_v42 = vadd.f32 %v2103_v9, %v2102_v37  ;;  %v2167_v49 = vpop.f32.mrf.mxu1  ;;  %v1531_v3 = vsel %vm1499_vm0, %v1437_v20, %v1515_v12  ;;  %v2049_v37 = vadd.f32 %v2718_v36, %v2712_v33 }
 0x177   : > { %v2105_v22 = vpop.f32.mrf.mxu0  ;;  %v2168_v61 = vadd.f32 %v2167_v49, %v2166_v40 }
 0x178   : > { %vm1500_vm1 = vcmp.gt.f32.partialorder %v1440_v11, 0.0  ;;  %v1516_v52 = vmul.f32 0.2, %v1440_v11  ;;  %v1348_v56 = vadd.f32 %v2104_v42, %v2705_v23  ;;  %v2169_v62 = vpop.f32.mrf.mxu1  ;;  %v1262_v12 = vadd.f32 %v2049_v37, %v1165_v25 }
 0x179   : > { %v2106_v1 = vpop.f32.mrf.mxu0 }
 0x17a   : > { %v1532_v5 = vsel %vm1500_vm1, %v1440_v11, %v1516_v52  ;;  %v1445_v15 = vadd.f32 %v2168_v61, %v1348_v56  ;;  %v2107_v16 = vadd.f32 %v2106_v1, %v2105_v22  ;;  %v2170_v17 = vpop.f32.mrf.mxu1  ;;  %v1991_v11 = vadd.f32 %v2725_v46, %v2720_v43 }
 0x17b   : > { %v1908_v21 = vpack.c.bf16 %v1532_v5, %v1531_v3  ;;  %v2108_v24 = vpop.f32.mrf.mxu0  ;;  %v2171_v10 = vadd.f32 %v2170_v17, %v2169_v62  ;;  %v2055_v43 = vadd.f32 %v2729_v48, %v2723_v45 }
 0x17c   : > { %v1351_v7 = vadd.f32 %v2107_v16, %v1254_v63  ;;  %v2172_v18 = vpop.f32.mrf.mxu1  ;;  %v1517_v27 = vmul.f32 0.2, %v1445_v15  ;;  %vm1501_vm2 = vcmp.gt.f32.partialorder %v1445_v15, 0.0 }
 0x17d   : > { %1909 = vst [vmem:[%s2791_s22] sm:$0xff] %v1908_v21   ;;  %v2109_v23 = vpop.f32.mrf.mxu0 }
 0x17e   : > { %v1448_v31 = vadd.f32 %v2171_v10, %v1351_v7  ;;  %v2110_v34 = vadd.f32 %v2109_v23, %v2108_v24  ;;  %v2173_v20 = vpop.f32.mrf.mxu1  ;;  %v1533_v49 = vsel %vm1501_vm2, %v1445_v15, %v1517_v27  ;;  %v1997_v10 = vadd.f32 %v2736_v58, %v2731_v55 }
 0x17f   : > { %v2111_v38 = vpop.f32.mrf.mxu0  ;;  %v2174_v41 = vadd.f32 %v2173_v20, %v2172_v18  ;;  %v2061_v55 = vadd.f32 %v2740_v60, %v2734_v57 }
 0x180   : > { %vm1502_vm3 = vcmp.gt.f32.partialorder %v1448_v31, 0.0  ;;  %v1518_v39 = vmul.f32 0.2, %v1448_v31  ;;  %v1356_v40 = vadd.f32 %v2110_v34, %v2716_v35  ;;  %v2175_v9 = vpop.f32.mrf.mxu1  ;;  %v1173_v35 = vadd.f32 %v1991_v11, %v2685_v2 }
 0x181   : > { %v2112_v42 = vpop.f32.mrf.mxu0 }
 0x182   : > { %v1534_v19 = vsel %vm1502_vm3, %v1448_v31, %v1518_v39  ;;  %v1453_v22 = vadd.f32 %v2174_v41, %v1356_v40  ;;  %v2113_v52 = vadd.f32 %v2112_v42, %v2111_v38  ;;  %v2176_v56 = vpop.f32.mrf.mxu1  ;;  %v1270_v7 = vadd.f32 %v2055_v43, %v1173_v35 }
 0x183   : > { %v1913_v33 = vpack.c.bf16 %v1534_v19, %v1533_v49  ;;  %v2114_v36 = vpop.f32.mrf.mxu0  ;;  %v2177_v62 = vadd.f32 %v2176_v56, %v2175_v9 }
 0x184   : > { %v1359_v61 = vadd.f32 %v2113_v52, %v1262_v12  ;;  %v2178_v63 = vpop.f32.mrf.mxu1  ;;  %v1519_v1 = vmul.f32 0.2, %v1453_v22  ;;  %vm1503_vm4 = vcmp.gt.f32.partialorder %v1453_v22, 0.0  ;;  %v2003_v52 = vadd.f32 %v2747_v8, %v2742_v4 }
 0x185   : > { %1945 = vst [vmem:[%s2791_s22 + $0x8] sm:$0xff] %v1913_v33   ;;  %v2115_v0 = vpop.f32.mrf.mxu0  ;;  %v2067_v4 = vadd.f32 %v2751_v14, %v2745_v6 }
 0x186   : > { %v1456_v3 = vadd.f32 %v2177_v62, %v1359_v61  ;;  %v2116_v5 = vadd.f32 %v2115_v0, %v2114_v36  ;;  %v2179_v16 = vpop.f32.mrf.mxu1  ;;  %v1535_v25 = vsel %vm1503_vm4, %v1453_v22, %v1519_v1 }
 0x187   : > { %v2117_v46 = vpop.f32.mrf.mxu0  ;;  %v2180_v21 = vadd.f32 %v2179_v16, %v2178_v63 }
 0x188   : > { %vm1504_vm5 = vcmp.gt.f32.partialorder %v1456_v3, 0.0  ;;  %v1520_v15 = vmul.f32 0.2, %v1456_v3  ;;  %v1364_v17 = vadd.f32 %v2116_v5, %v2727_v47  ;;  %v2181_v24 = vpop.f32.mrf.mxu1  ;;  %v1181_v47 = vadd.f32 %v1997_v10, %v2685_v2 }
 0x189   : > { %v2118_v18 = vpop.f32.mrf.mxu0  ;;  %v2009_v10 = vadd.f32 %v2758_v29, %v2753_v26  ;;  %v2073_v26 = vadd.f32 %v2762_v32, %v2756_v28 }
 0x18a   : > { %v1536_v23 = vsel %vm1504_vm5, %v1456_v3, %v1520_v15  ;;  %v1461_v27 = vadd.f32 %v2180_v21, %v1364_v17  ;;  %v2119_v31 = vadd.f32 %v2118_v18, %v2117_v46  ;;  %v2182_v34 = vpop.f32.mrf.mxu1  ;;  %v1278_v22 = vadd.f32 %v2061_v55, %v1181_v47 }
 0x18b   : > { %v1918_v45 = vpack.c.bf16 %v1536_v23, %v1535_v25  ;;  %v2120_v48 = vpop.f32.mrf.mxu0  ;;  %v2183_v37 = vadd.f32 %v2182_v34, %v2181_v24 }
 0x18c   : > { %v1367_v20 = vadd.f32 %v2119_v31, %v1270_v7  ;;  %v2184_v38 = vpop.f32.mrf.mxu1  ;;  %v1521_v40 = vmul.f32 0.2, %v1461_v27  ;;  %vm1505_vm6 = vcmp.gt.f32.partialorder %v1461_v27, 0.0 }
 0x18d   : > { %1946 = vst [vmem:[%s2791_s22 + $0x10] sm:$0xff] %v1918_v45   ;;  %v2121_v39 = vpop.f32.mrf.mxu0 }
 0x18e   : > { %v1464_v41 = vadd.f32 %v2183_v37, %v1367_v20  ;;  %v2122_v9 = vadd.f32 %v2121_v39, %v2120_v48  ;;  %v2185_v12 = vpop.f32.mrf.mxu1  ;;  %v1537_v33 = vsel %vm1505_vm6, %v1461_v27, %v1521_v40 }
 0x18f   : > { %v2123_v58 = vpop.f32.mrf.mxu0  ;;  %v2186_v49 = vadd.f32 %v2185_v12, %v2184_v38 }
 0x190   : > { %vm1506_vm7 = vcmp.gt.f32.partialorder %v1464_v41, 0.0  ;;  %v1522_v11 = vmul.f32 0.2, %v1464_v41  ;;  %v1372_v42 = vadd.f32 %v2122_v9, %v2738_v59  ;;  %v2187_v19 = vpop.f32.mrf.mxu1  ;;  %v1189_v59 = vadd.f32 %v2003_v52, %v2685_v2 }
 0x191   : > { %v2124_v56 = vpop.f32.mrf.mxu0 }
 0x192   : > { %v1538_v36 = vsel %vm1506_vm7, %v1464_v41, %v1522_v11  ;;  %v1469_v61 = vadd.f32 %v2186_v49, %v1372_v42  ;;  %v2125_v62 = vadd.f32 %v2124_v56, %v2123_v58  ;;  %v2188_v63 = vpop.f32.mrf.mxu1  ;;  %v1286_v7 = vadd.f32 %v2067_v4, %v1189_v59 }
 0x193   : > { %v1923_v57 = vpack.c.bf16 %v1538_v36, %v1537_v33  ;;  %v2126_v60 = vpop.f32.mrf.mxu0  ;;  %v2189_v0 = vadd.f32 %v2188_v63, %v2187_v19  ;;  %v2015_v11 = vadd.f32 %v2769_v51, %v2764_v44  ;;  %v2079_v44 = vadd.f32 %v2775_v54, %v2767_v50 }
 0x194   : > { %v1375_v35 = vadd.f32 %v2125_v62, %v1278_v22  ;;  %v2190_v1 = vpop.f32.mrf.mxu1  ;;  %v1523_v5 = vmul.f32 0.2, %v1469_v61  ;;  %vm1507_vm8 = vcmp.gt.f32.partialorder %v1469_v61, 0.0 }
 0x195   : > { %1947 = vst [vmem:[%s2791_s22 + $0x18] sm:$0xff] %v1923_v57   ;;  %v2127_v3 = vpop.f32.mrf.mxu0 }
 0x196   : > { %v1472_v16 = vadd.f32 %v2189_v0, %v1375_v35  ;;  %v2128_v43 = vadd.f32 %v2127_v3, %v2126_v60  ;;  %v2191_v46 = vpop.f32.mrf.mxu1  ;;  %v1539_v25 = vsel %vm1507_vm8, %v1469_v61, %v1523_v5 }
 0x197   : > { %v2129_v8 = vpop.f32.mrf.mxu0  ;;  %v2192_v21 = vadd.f32 %v2191_v46, %v2190_v1 }
 0x198   : > { %vm1508_vm9 = vcmp.gt.f32.partialorder %v1472_v16, 0.0  ;;  %v1524_v15 = vmul.f32 0.2, %v1472_v16  ;;  %v1380_v17 = vadd.f32 %v2128_v43, %v2749_v13  ;;  %v2193_v24 = vpop.f32.mrf.mxu1  ;;  %v1197_v13 = vadd.f32 %v2009_v10, %v2685_v2 }
 0x199   : > { %v2130_v18 = vpop.f32.mrf.mxu0 }
 0x19a   : > { %v1540_v23 = vsel %vm1508_vm9, %v1472_v16, %v1524_v15  ;;  %v1477_v27 = vadd.f32 %v2192_v21, %v1380_v17  ;;  %v2131_v31 = vadd.f32 %v2130_v18, %v2129_v8  ;;  %v2194_v34 = vpop.f32.mrf.mxu1  ;;  %v1294_v58 = vadd.f32 %v2073_v26, %v1197_v13 }
 0x19b   : > { %v1928_v6 = vpack.c.bf16 %v1540_v23, %v1539_v25  ;;  %v2132_v14 = vpop.f32.mrf.mxu0  ;;  %v2195_v48 = vadd.f32 %v2194_v34, %v2193_v24 }
 0x19c   : > { %v1383_v45 = vadd.f32 %v2131_v31, %v1286_v7  ;;  %v2196_v20 = vpop.f32.mrf.mxu1  ;;  %v1525_v38 = vmul.f32 0.2, %v1477_v27  ;;  %vm1509_vm10 = vcmp.gt.f32.partialorder %v1477_v27, 0.0 }
 0x19d   : > { %1948 = vst [vmem:[%s2791_s22 + $0x20] sm:$0xff] %v1928_v6   ;;  %v2133_v37 = vpop.f32.mrf.mxu0 }
 0x19e   : > { %v1480_v47 = vadd.f32 %v2195_v48, %v1383_v45  ;;  %v2134_v39 = vadd.f32 %v2133_v37, %v2132_v14  ;;  %v2197_v40 = vpop.f32.mrf.mxu1  ;;  %v1541_v49 = vsel %vm1509_vm10, %v1477_v27, %v1525_v38 }
 0x19f   : > { %v2135_v29 = vpop.f32.mrf.mxu0  ;;  %v2198_v12 = vadd.f32 %v2197_v40, %v2196_v20 }
 0x1a0   : > { %vm1510_vm11 = vcmp.gt.f32.partialorder %v1480_v47, 0.0  ;;  %v1526_v41 = vmul.f32 0.2, %v1480_v47  ;;  %v1388_v9 = vadd.f32 %v2134_v39, %v2760_v30  ;;  %v2199_v55 = vpop.f32.mrf.mxu1  ;;  %v1205_v30 = vadd.f32 %v2015_v11, %v2685_v2 }
 0x1a1   : > { %v2136_v42 = vpop.f32.mrf.mxu0 }
 0x1a2   : > { %v1542_v19 = vsel %vm1510_vm11, %v1480_v47, %v1526_v41  ;;  %v1485_v22 = vadd.f32 %v2198_v12, %v1388_v9  ;;  %v2137_v52 = vadd.f32 %v2136_v42, %v2135_v29  ;;  %v2200_v56 = vpop.f32.mrf.mxu1  ;;  %v1302_v2 = vadd.f32 %v2079_v44, %v1205_v30 }
 0x1a3   : > { %v1933_v28 = vpack.c.bf16 %v1542_v19, %v1541_v49  ;;  %v2138_v32 = vpop.f32.mrf.mxu0  ;;  %v2201_v36 = vadd.f32 %v2200_v56, %v2199_v55 }
 0x1a4   : > { %v1391_v33 = vadd.f32 %v2137_v52, %v1294_v58  ;;  %v2202_v61 = vpop.f32.mrf.mxu1  ;;  %v1527_v63 = vmul.f32 0.2, %v1485_v22  ;;  %vm1511_vm12 = vcmp.gt.f32.partialorder %v1485_v22, 0.0 }
 0x1a5   : > { %1949 = vst [vmem:[%s2791_s22 + $0x28] sm:$0xff] %v1933_v28   ;;  %v2139_v62 = vpop.f32.mrf.mxu0 }
 0x1a6   : > { %v1488_v57 = vadd.f32 %v2201_v36, %v1391_v33  ;;  %v2140_v60 = vadd.f32 %v2139_v62, %v2138_v32  ;;  %v2203_v35 = vpop.f32.mrf.mxu1  ;;  %v1543_v16 = vsel %vm1511_vm12, %v1485_v22, %v1527_v63 }
 0x1a7   : > { %v2141_v51 = vpop.f32.mrf.mxu0  ;;  %v2204_v59 = vadd.f32 %v2203_v35, %v2202_v61 }
 0x1a8   : > { %vm1512_vm13 = vcmp.gt.f32.partialorder %v1488_v57, 0.0  ;;  %v1528_v0 = vmul.f32 0.2, %v1488_v57  ;;  %v1396_v1 = vadd.f32 %v2140_v60, %v2773_v53  ;;  %v2205_v3 = vpop.f32.mrf.mxu1 }
 0x1a9   : > { %v2142_v5 = vpop.f32.mrf.mxu0 }
 0x1aa   : > { %v1544_v43 = vsel %vm1512_vm13, %v1488_v57, %v1528_v0  ;;  %v1493_v46 = vadd.f32 %v2204_v59, %v1396_v1  ;;  %v2143_v4 = vadd.f32 %v2142_v5, %v2141_v51  ;;  %v2206_v8 = vpop.f32.mrf.mxu1 }
 0x1ab   : > { %v1938_v15 = vpack.c.bf16 %v1544_v43, %v1543_v16  ;;  %v2207_v54 = vadd.f32 %v2206_v8, %v2205_v3 }
 0x1ac   : > { %v1399_v50 = vadd.f32 %v2143_v4, %v1302_v2  ;;  %v1529_v17 = vmul.f32 0.2, %v1493_v46  ;;  %vm1513_vm14 = vcmp.gt.f32.partialorder %v1493_v46, 0.0 }
 0x1ad   : > { %1950 = vst [vmem:[%s2791_s22 + $0x30] sm:$0xff] %v1938_v15  }
 0x1ae   : > { %v1496_v53 = vadd.f32 %v2207_v54, %v1399_v50  ;;  %v1545_v24 = vsel %vm1513_vm14, %v1493_v46, %v1529_v17 }
 0x1b0   : > { %vm1514_vm15 = vcmp.gt.f32.partialorder %v1496_v53, 0.0  ;;  %v1530_v21 = vmul.f32 0.2, %v1496_v53 }
 0x1b2   : > { %v1546_v7 = vsel %vm1514_vm15, %v1496_v53, %v1530_v21 }
 0x1b3   : > { %v1943_v10 = vpack.c.bf16 %v1546_v7, %v1545_v24 }
 0x1b5   : > { %1951 = vst [vmem:[%s2791_s22 + $0x38] sm:$0xff] %v1943_v10  }
 0x1b6   : > { %2402 = shalt.err (!%p2399_p0)
}
 0x1b7   : > { %s2403_s21 = scalar_lea.hbm %s2838_s7, 1024  ;;  %s2407_s29 = scalar_lea.hbm %s2887_s3, 2048 }
 0x1b8   : > { %p2404_p5 = scmp.ne.s32.totalorder %s2838_s7, %s2403_s21  ;;  %p2408_p4 = scmp.lt.s32.totalorder %s2838_s7, %s2887_s3 }
 0x1b9   : > { %p2409_p6 = scmp.lt.s32.totalorder %s2407_s29, %s2403_s21 }
 0x1ba   : > { %p2405_p9 = pnand %p2404_p5, %p2903_p11 }
 0x1bb   : > { %p2410_p8 = por %p2409_p6, %p2408_p4 }
 0x1bc   : > { %p2406_p1 = pneg %p2405_p9 }
 0x1be   : > { %p2411_p3 = pnand %p2410_p8, %p2406_p1 }
 0x1c0   : > { %2414 = shalt.err (!%p2411_p3)
}
 0x1c1   : > { %s2466_s17 = smov 64   ;;  %s2467_s22 = smov 4  }
 0x1c2   : > { %2214 = dma.vmem_to_hbm [thread:$0]  (%p2903_p11), %s2840_s25, 1024, %s2838_s7, %s1628_s8, %s2466_s17, %s2466_s17, %s2467_s22  }
 0x1c3 PF: > { %s1656_s23 = sand.u32 1, %s2445_s12   ;;  %p2904_p7 = scmp.ne.s32.totalorder %s2893_s19, 0 }
 0x1c4   : > { %p2905_p12 = scmp.ge.s32.totalorder %s2457_s15, 2  ;;  %s1657_s30 = scalar_lea.sflag [#allocation4], %s1656_s23 }
 0x1c6   : > { %p2225_p10 = pnand %p2905_p12, %p2904_p7 }
 0x1c8   : > { %p2226_p2 = pneg %p2225_p10 }
 0x1ca   : > { %2440 = dma.done.wait (%p2226_p2), %s1657_s30, 1024  }
 0x1cb   : > { %2442 = vsyncadd (%p2226_p2), %s1657_s30, 4294966272  ;;  %p17_p13 = scmp.ge.s32.totalorder %s2542_s24, 4   ;;  %s2906_s12 = smov %s2449_s13 }
 0x1cc   : > { %s2907_s13 = smov %s2453_s14  ;;  %s2908_s14 = smov %s2559_s5 }
 0x1cd   : > { %s2909_s15 = smov %s2542_s24  ;;  %19 = sbr.rel (!%p17_p13) target bundleno = 6 (0x6), region = 81 }
 0x1d2   :  { %1662 = vsyncpa [#allocation3], 1 }
 0x1d3   :  { %1664 = vsyncpa [#allocation3 + $0x1], 1 }
 0x1d4   :  { %1665 = vsyncpa [#allocation6], 1 }
 0x1d5   :  { %1666 = vsyncpa [#allocation4], 1 }
 0x1d6   :  { %1668 = vsyncpa [#allocation4 + $0x1], 1 }

</bundles_post_ra>
